<compile_context>
chip_gen: v7x
topology: tpu7x:2x2x1
jax: 0.10.0
libtpu: 0.0.40
codegen_flags: <defaults>
</compile_context>

<pallas_src>
import functools
import math

import jax
import jax.numpy as jnp
from jax import lax
from jax.experimental import pallas as pl
from jax.experimental.pallas import tpu as pltpu


# Finite "minus infinity": NaN-safe even if a whole row were masked.
_MASK_VALUE = -1e30


def _round_up(x, m):
    return ((x + m - 1) // m) * m


def _vmem_limit(block_bytes):
    # 2x the computed double-buffered block bytes as headroom for Mosaic
    # internal scratch / layout padding; never below a 32 MiB floor, clamped to
    # v7x's 64 MiB physical VMEM (always safe on v5e/v6e's 128 MiB).
    return int(min(max(2 * block_bytes, 32 << 20), 64 << 20))


# ---------------------------------------------------------------------------
# Pass 1: fused QKV projection   qkv = x @ [Wq*scale ; Wk ; Wv]^T
# ---------------------------------------------------------------------------
def _qkv_proj_kernel(x_ref, w_ref, q_ref, k_ref, v_ref, *, d_out_p):
    # x: [tp, d_in_p], w: [3*d_out_p, d_in_p] (PyTorch Linear layout).  The
    # contraction over d_in is expressed directly -> no transpose pass.
    qkv = lax.dot_general(
        x_ref[...], w_ref[...],
        dimension_numbers=(((1,), (1,)), ((), ())),
        preferred_element_type=jnp.float32)                 # [tp, 3*d_out_p]
    q_ref[...] = qkv[:, :d_out_p].astype(q_ref.dtype)
    k_ref[...] = qkv[:, d_out_p:2 * d_out_p].astype(k_ref.dtype)
    v_ref[...] = qkv[:, 2 * d_out_p:].astype(v_ref.dtype)


# ---------------------------------------------------------------------------
# Pass 2: flash attention over the projected (pre-scaled) Q, K, V
# ---------------------------------------------------------------------------
def _flash_attn_kernel(q_ref, k_ref, v_ref, o_ref, m_sc, l_sc, acc_sc,
                       *, seq_len, kv_tile, mask_kv, exp_dtype):
    j = pl.program_id(1)

    # Init the online-softmax state once per query tile.
    @pl.when(j == 0)
    def _():
        m_sc[...] = jnp.full_like(m_sc, -jnp.inf)
        l_sc[...] = jnp.zeros_like(l_sc)
        acc_sc[...] = jnp.zeros_like(acc_sc)

    # scores = (Q * scale) @ K^T : contract feature dims directly (no XLU
    # transpose of K; the scale was folded into W_q in the wrapper).
    s = lax.dot_general(q_ref[...], k_ref[...],
                        dimension_numbers=(((1,), (1,)), ((), ())),
                        preferred_element_type=jnp.float32)     # [tq, tkv]

    if mask_kv:
        # Only the final kv tile can be partial (t_pad is a multiple of tkv),
        # so the iota+select VPU pass is only paid on that boundary tile.
        def _mask(sc):
            kv_idx = j * kv_tile + lax.broadcasted_iota(jnp.int32, sc.shape, 1)
            return jnp.where(kv_idx < seq_len, sc, _MASK_VALUE)

        s = lax.cond((j + 1) * kv_tile > seq_len, _mask, lambda sc: sc, s)

    # Online softmax accumulation (state in f32; exp optionally in bf16).
    m_prev = m_sc[...]
    m_new = jnp.maximum(m_prev, jnp.max(s, axis=-1, keepdims=True))
    alpha = jnp.exp(m_prev - m_new)
    p = jnp.exp((s - m_new).astype(exp_dtype))
    l_sc[...] = alpha * l_sc[...] + jnp.sum(
        p.astype(jnp.float32), axis=-1, keepdims=True)
    acc_sc[...] = alpha * acc_sc[...] + lax.dot_general(
        p.astype(v_ref.dtype), v_ref[...],
        dimension_numbers=(((1,), (0,)), ((), ())),
        preferred_element_type=jnp.float32)
    m_sc[...] = m_new

    # Finalize once per query tile (EUP approximate reciprocal: free slot).
    @pl.when(j == pl.num_programs(1) - 1)
    def _():
        o_ref[...] = (acc_sc[...] *
                      pl.reciprocal(l_sc[...], approx=True)).astype(o_ref.dtype)


# ---------------------------------------------------------------------------
# Wrapper
# ---------------------------------------------------------------------------
def self_attention_v2(x, w_query, w_key, w_value, *,
                      q_tile=256, kv_tile=512,
                      compute_dtype=jnp.bfloat16, exp_dtype=None):
    """SelfAttention_v2 forward.

    x: [T, d_in]; w_*: [d_out, d_in] (PyTorch nn.Linear layout, qkv_bias=False).
    compute_dtype: MXU input dtype.  bf16 is the fast path on every generation
      (v5e/v6e/v7x MXUs are bf16-native); use f32 for exact numerics.
    exp_dtype: dtype for the softmax exp.  None -> f32 (v5e-safe); pass
      jnp.bfloat16 on v6e/v7x where the single EUP can become the binding slot.
    """
    T, d_in = x.shape
    d_out = w_query.shape[0]
    out_dtype = x.dtype
    if exp_dtype is None:
        exp_dtype = jnp.float32
    cdt_size = jnp.dtype(compute_dtype).itemsize
    out_size = jnp.dtype(out_dtype).itemsize

    # Lane-dense padding: feature dims -> multiples of 128.
    d_in_p = _round_up(d_in, 128)
    d_out_p = _round_up(d_out, 128)

    # Tiles.  tkv is forced to a multiple of tq so t_pad (a multiple of tkv) is
    # a multiple of both tiles and at most one kv tile is partial.
    tq = min(q_tile, _round_up(T, 8))
    tkv = min(kv_tile, _round_up(T, 8))
    tkv = max(tq, (tkv // tq) * tq)
    t_pad = _round_up(T, tkv)

    # Wrapper-side prep: fold 1/sqrt(d_out) into W_q (true d_out, not padded),
    # fuse the three weights into one [3*d_out_p, d_in_p] matrix, and cast
    # everything that feeds the MXU to compute_dtype (halves HBM->VMEM bytes
    # in the bf16 path).
    scale = 1.0 / math.sqrt(d_out)
    pad_w = lambda w: jnp.pad(w, ((0, d_out_p - d_out), (0, d_in_p - d_in)))
    w_fused = jnp.concatenate(
        [pad_w(w_query * scale), pad_w(w_key), pad_w(w_value)],
        axis=0).astype(compute_dtype)                        # [3*d_out_p, d_in_p]
    x_p = jnp.pad(x, ((0, t_pad - T), (0, d_in_p - d_in))).astype(compute_dtype)

    # ---- pass 1: QKV projection (each row projected exactly once) ----
    tp = tq
    proj_vmem = 2 * cdt_size * (tp * d_in_p + 3 * d_out_p * d_in_p
                                + 3 * tp * d_out_p)
    qkv_shape = jax.ShapeDtypeStruct((t_pad, d_out_p), compute_dtype)
    q_p, k_p, v_p = pl.pallas_call(
        functools.partial(_qkv_proj_kernel, d_out_p=d_out_p),
        out_shape=(qkv_shape, qkv_shape, qkv_shape),
        grid_spec=pltpu.PrefetchScalarGridSpec(
            num_scalar_prefetch=0,
            grid=(t_pad // tp,),
            in_specs=[
                pl.BlockSpec((tp, d_in_p), lambda i: (i, 0)),          # x rows
                pl.BlockSpec((3 * d_out_p, d_in_p), lambda i: (0, 0)),  # fused W
            ],
            out_specs=[pl.BlockSpec((tp, d_out_p), lambda i: (i, 0))] * 3),
        compiler_params=pltpu.CompilerParams(
            dimension_semantics=("parallel",),
            vmem_limit_bytes=_vmem_limit(proj_vmem)),
        cost_estimate=pl.CostEstimate(
            flops=2 * T * d_in * 3 * d_out,
            transcendentals=0,
            bytes_accessed=cdt_size * (T * d_in + 3 * d_out * d_in
                                       + 3 * T * d_out)),
    )(x_p, w_fused)

    # ---- pass 2: flash attention ----
    grid = (t_pad // tq, t_pad // tkv)
    attn_vmem = (2 * cdt_size * (tq * d_out_p + 2 * tkv * d_out_p)   # in blocks
                 + 2 * out_size * tq * d_out_p                       # out blocks
                 + 4 * (tq * d_out_p + 2 * tq * 128))                # f32 scratch

    kernel = functools.partial(
        _flash_attn_kernel, seq_len=T, kv_tile=tkv,
        mask_kv=(t_pad != T), exp_dtype=exp_dtype)

    out = pl.pallas_call(
        kernel,
        out_shape=jax.ShapeDtypeStruct((t_pad, d_out_p), out_dtype),
        grid_spec=pltpu.PrefetchScalarGridSpec(
            num_scalar_prefetch=0,
            grid=grid,
            in_specs=[
                pl.BlockSpec((tq, d_out_p), lambda i, j: (i, 0)),    # Q
                pl.BlockSpec((tkv, d_out_p), lambda i, j: (j, 0)),   # K
                pl.BlockSpec((tkv, d_out_p), lambda i, j: (j, 0)),   # V
            ],
            out_specs=pl.BlockSpec((tq, d_out_p), lambda i, j: (i, 0)),
            scratch_shapes=[
                pltpu.VMEM((tq, 1), jnp.float32),         # running max
                pltpu.VMEM((tq, 1), jnp.float32),         # running sum
                pltpu.VMEM((tq, d_out_p), jnp.float32),   # output accumulator
            ]),
        compiler_params=pltpu.CompilerParams(
            dimension_semantics=("parallel", "arbitrary"),
            vmem_limit_bytes=_vmem_limit(attn_vmem)),
        cost_estimate=pl.CostEstimate(
            flops=4 * T * T * d_out,
            transcendentals=T * T,
            bytes_accessed=cdt_size * 3 * T * d_out + out_size * T * d_out),
    )(q_p, k_p, v_p)

    return out[:T, :d_out]


def _reference(x, w_query, w_key, w_value):
    q = x @ w_query.T
    k = x @ w_key.T
    v = x @ w_value.T
    scores = (q @ k.T) / jnp.sqrt(jnp.float32(k.shape[-1]))
    w = jax.nn.softmax(scores, axis=-1)
    return w @ v


if __name__ == "__main__":
    key = jax.random.PRNGKey(0)
    kx, kq, kk, kv = jax.random.split(key, 4)

    T, d_in, d_out = 8, 32, 16
    x = jax.random.normal(kx, (T, d_in), dtype=jnp.float32)
    # Deterministic PyTorch-Linear-like init: U(-1/sqrt(d_in), 1/sqrt(d_in)).
    bound = 1.0 / math.sqrt(d_in)
    w_query = jax.random.uniform(kq, (d_out, d_in), jnp.float32, -bound, bound)
    w_key = jax.random.uniform(kk, (d_out, d_in), jnp.float32, -bound, bound)
    w_value = jax.random.uniform(kv, (d_out, d_in), jnp.float32, -bound, bound)

    # Exact-ish path: f32 MXU inputs, f32 exp.
    out = jax.block_until_ready(
        self_attention_v2(x, w_query, w_key, w_value, compute_dtype=jnp.float32))
    ref = _reference(x, w_query, w_key, w_value)
    assert out.shape == (T, d_out)
    assert jnp.allclose(out, ref, atol=5e-3, rtol=5e-3), \
        float(jnp.max(jnp.abs(out - ref)))

    # Fast path: bf16 MXU inputs + bf16 exp + kv padding/mask path (T=12 -> 16).
    T2 = 12
    x2 = jax.random.normal(kx, (T2, d_in), dtype=jnp.float32)
    out2 = jax.block_until_ready(
        self_attention_v2(x2, w_query, w_key, w_value,
                          compute_dtype=jnp.bfloat16, exp_dtype=jnp.bfloat16))
    ref2 = _reference(x2, w_query, w_key, w_value)
    assert out2.shape == (T2, d_out)
    assert jnp.allclose(out2, ref2, atol=5e-2, rtol=5e-2), \
        float(jnp.max(jnp.abs(out2 - ref2)))

    print("KERNEL_OK")
</pallas_src>

<mosaic_0001>
module attributes {stable_mosaic.version = 11 : i64} {
  func.func @_qkv_proj_kernel(%arg0: i32, %arg1: memref<8x128xf32, #tpu.memory_space<vmem>>, %arg2: memref<384x128xf32, #tpu.memory_space<vmem>>, %arg3: memref<8x128xf32, #tpu.memory_space<vmem>>, %arg4: memref<8x128xf32, #tpu.memory_space<vmem>>, %arg5: memref<8x128xf32, #tpu.memory_space<vmem>>) attributes {dimension_semantics = [#tpu.dimension_semantics<parallel>], iteration_bounds = array<i64: 1>, scalar_prefetch = 0 : i64, scratch_operands = 0 : i64, tpu.core_type = #tpu.core_type<tc>, window_params = [{transform_indices = @transform_0, window_bounds = array<i64: 8, 128>}, {pipeline_mode = #tpu.pipeline_mode<synchronous>, transform_indices = @transform_1, window_bounds = array<i64: 384, 128>}, {transform_indices = @transform_2, window_bounds = array<i64: 8, 128>}, {transform_indices = @transform_3, window_bounds = array<i64: 8, 128>}, {transform_indices = @transform_4, window_bounds = array<i64: 8, 128>}]} {
    %c0 = arith.constant 0 : index
    %c0_0 = arith.constant 0 : index
    %0 = vector.load %arg1[%c0, %c0_0] : memref<8x128xf32, #tpu.memory_space<vmem>>, vector<8x128xf32>
    %c0_1 = arith.constant 0 : index
    %c0_2 = arith.constant 0 : index
    %1 = vector.load %arg2[%c0_1, %c0_2] : memref<384x128xf32, #tpu.memory_space<vmem>>, vector<384x128xf32>
    %cst = arith.constant dense<0.000000e+00> : vector<8x384xf32>
    %2 = tpu.matmul %0, %1, %cst {dimension_numbers = #tpu.dot_dimension_numbers<[1], [1], [0], [0], [0, 0, 1, 0], [], []>} : vector<8x128xf32>, vector<384x128xf32>, vector<8x384xf32> -> vector<8x384xf32>
    %3 = vector.extract_strided_slice %2 {offsets = [0, 0], sizes = [8, 128], strides = [1, 1]} : vector<8x384xf32> to vector<8x128xf32>
    %c0_3 = arith.constant 0 : index
    %c0_4 = arith.constant 0 : index
    %4 = vector.load %arg3[%c0_3, %c0_4] : memref<8x128xf32, #tpu.memory_space<vmem>>, vector<8x128xf32>
    tpu.vector_store %arg3[%c0_3, %c0_4], %3 {strides = array<i32>} : memref<8x128xf32, #tpu.memory_space<vmem>>, vector<8x128xf32>,
    %5 = vector.extract_strided_slice %2 {offsets = [0, 128], sizes = [8, 128], strides = [1, 1]} : vector<8x384xf32> to vector<8x128xf32>
    %c0_5 = arith.constant 0 : index
    %c0_6 = arith.constant 0 : index
    %6 = vector.load %arg4[%c0_5, %c0_6] : memref<8x128xf32, #tpu.memory_space<vmem>>, vector<8x128xf32>
    tpu.vector_store %arg4[%c0_5, %c0_6], %5 {strides = array<i32>} : memref<8x128xf32, #tpu.memory_space<vmem>>, vector<8x128xf32>,
    %7 = vector.extract_strided_slice %2 {offsets = [0, 256], sizes = [8, 128], strides = [1, 1]} : vector<8x384xf32> to vector<8x128xf32>
    %c0_7 = arith.constant 0 : index
    %c0_8 = arith.constant 0 : index
    %8 = vector.load %arg5[%c0_7, %c0_8] : memref<8x128xf32, #tpu.memory_space<vmem>>, vector<8x128xf32>
    tpu.vector_store %arg5[%c0_7, %c0_8], %7 {strides = array<i32>} : memref<8x128xf32, #tpu.memory_space<vmem>>, vector<8x128xf32>,
    return
  }
  func.func @transform_0(%arg0: i32) -> (i32, i32) {
    %c0_i32 = arith.constant 0 : i32
    %c0_i32_0 = arith.constant 0 : i32
    return %arg0, %c0_i32 : i32, i32
  }
  func.func @transform_1(%arg0: i32) -> (i32, i32) {
    %c0_i32 = arith.constant 0 : i32
    %c0_i32_0 = arith.constant 0 : i32
    %c0_i32_1 = arith.constant 0 : i32
    return %c0_i32, %c0_i32_0 : i32, i32
  }
  func.func @transform_2(%arg0: i32) -> (i32, i32) {
    %c0_i32 = arith.constant 0 : i32
    %c0_i32_0 = arith.constant 0 : i32
    return %arg0, %c0_i32 : i32, i32
  }
  func.func @transform_3(%arg0: i32) -> (i32, i32) {
    %c0_i32 = arith.constant 0 : i32
    %c0_i32_0 = arith.constant 0 : i32
    return %arg0, %c0_i32 : i32, i32
  }
  func.func @transform_4(%arg0: i32) -> (i32, i32) {
    %c0_i32 = arith.constant 0 : i32
    %c0_i32_0 = arith.constant 0 : i32
    return %arg0, %c0_i32 : i32, i32
  }
}

</mosaic_0001>

<bundles_post_ra>
// kernel: tpu_custom_call.1
= control target key start
LH: loop header
LB: loop body
LE: loop exit
PB: predicated region body
PF: predicated region fallthrough
CT: control target
= control target key end

     0   :  { %10 = vsyncpa [#allocation3], 0  ;;  %s677_s0 = inlined_call_operand.hbm [shape: f32[8,128], index: 0, kind: input, shape index: {}]   ;;  %s678_s1 = inlined_call_operand.hbm [shape: f32[384,128], index: 1, kind: input, shape index: {}]   ;;  %s679_s2 = inlined_call_operand.hbm [shape: f32[8,128], index: 2, kind: output, shape index: {0}]   ;;  %s680_s3 = inlined_call_operand.hbm [shape: f32[8,128], index: 3, kind: output, shape index: {1}]   ;;  %s681_s4 = inlined_call_operand.hbm [shape: f32[8,128], index: 4, kind: output, shape index: {2}]  }
   0x1   :  { %11 = vsyncpa [#allocation6], 0 }
   0x2   :  { %12 = vsyncpa [#allocation4], 0 }
   0x3   :  { %13 = vsyncpa [#allocation9], 0  ;;  %s548_s15 = smov [#allocation2]   ;;  %s549_s17 = smov [#allocation5]  }
   0x4   :  { %s20_s16 = sshll.u32 %s548_s15, 4  ;;  %s29_s18 = sshll.u32 %s549_s17, 4  ;;  %s21_s16 = int_to_ptr.vmem [resolvable:$true] %s20_s16  ;;  %s583_s18 = int_to_ptr.vmem [resolvable:$true] %s29_s18 }
   0x5   :  { %s430_s21 = scalar_lea.hbm %s677_s0, 128 }
   0x6   :  { %p431_p0 = scmp.ne.s32.totalorder %s677_s0, %s430_s21  ;;  %p434_p1 = scmp.lt.u32.totalorder %s430_s21, %s677_s0 }
   0x8   :  { %p436_p2 = pnand %p434_p1, %p431_p0 }
   0xa   :  { %439 = shalt.err (!%p436_p2)
}
   0xb   :  { %s440_s26 = scalar_lea.vmem %s21_s16, 128  ;;  %p445_p4 = scmp.lt.s32.totalorder %s21_s16, %s21_s16 }
   0xc   :  { %p441_p3 = scmp.ne.s32.totalorder %s21_s16, %s440_s26  ;;  %p446_p5 = scmp.lt.s32.totalorder %s440_s26, %s440_s26 }
   0xe   :  { %p447_p6 = por %p446_p5, %p445_p4 }
  0x10   :  { %p448_p7 = pnand %p447_p6, %p441_p3 }
  0x12   :  { %451 = shalt.err (!%p448_p7)
}
  0x13   :  { %23 = dma.hbm_to_vmem [thread:$0]  %s677_s0, 128, %s21_s16, [#allocation3]  }
  0x14   :  { %s452_s5 = scalar_lea.hbm %s678_s1, 6144 }
  0x15   :  { %p453_p8 = scmp.ne.s32.totalorder %s678_s1, %s452_s5  ;;  %p456_p9 = scmp.lt.u32.totalorder %s452_s5, %s678_s1 }
  0x17   :  { %p458_p10 = pnand %p456_p9, %p453_p8 }
  0x19   :  { %461 = shalt.err (!%p458_p10)
}
  0x1a   :  { %s462_s10 = scalar_lea.vmem %s583_s18, 6144  ;;  %p467_p12 = scmp.lt.s32.totalorder %s583_s18, %s583_s18 }
  0x1b   :  { %p463_p11 = scmp.ne.s32.totalorder %s583_s18, %s462_s10  ;;  %p468_p13 = scmp.lt.s32.totalorder %s462_s10, %s462_s10 }
  0x1d   :  { %p469_p0 = por %p468_p13, %p467_p12 }
  0x1f   :  { %p470_p1 = pnand %p469_p0, %p463_p11 }
  0x21   :  { %473 = shalt.err (!%p470_p1)
}
  0x22   :  { %s550_s0 = smov 128   ;;  %s551_s11 = smov 8  }
  0x23   :  { %35 = dma.hbm_to_vmem [thread:$0]  %s678_s1, 6144, %s583_s18, [#allocation6], %s550_s0, %s550_s0, %s551_s11  }
  0x24   :  { %540 = dma.done.wait [#allocation3], 128  }
  0x25   :  { %541 = vsyncadd [#allocation3], 4294967168 }
  0x26   :  { %542 = dma.done.wait [#allocation6], 6144  }
  0x27   :  { %543 = vsyncadd [#allocation6], 4294961152  ;;  %v552_v0 = vmov 0.0|0.0   ;;  %vm553_vm0 = vmmov 0   ;;  %v554_v1 = vmov 0.0   ;;  %v59_v2 = vld [vmem:[#allocation5 + $0x80] sm:$0xff] }
  0x28   :  { %396 = vmatprep.subr.bf16.mxu1 %v552_v0  ;;  %361 = vmatprep.mubr.msk.f32.mxu1 %vm553_vm0, %v554_v1  ;;  %v60_v3 = vld [vmem:[#allocation5 + $0x88] sm:$0xff]  ;;  %v43_v4 = vld [vmem:[#allocation5] sm:$0xff]  ;;  %v61_v11 = vld [vmem:[#allocation5 + $0x90] sm:$0xff]  ;;  %s555_s1 = smov [#allocation7]   ;;  %s556_s15 = smov [#allocation8]  }
  0x29   :  { %v364_v5 = vpack.c.bf16 %v60_v3, %v59_v2  ;;  %v44_v6 = vld [vmem:[#allocation5 + $0x8] sm:$0xff]  ;;  %v75_v7 = vld [vmem:[#allocation5 + $0x100] sm:$0xff]  ;;  %v62_v12 = vld [vmem:[#allocation5 + $0x98] sm:$0xff]  ;;  %s241_s14 = sshll.u32 %s555_s1, 4  ;;  %s251_s16 = sshll.u32 %s556_s15, 4  ;;  %s242_s14 = int_to_ptr.vmem [resolvable:$true] %s241_s14  ;;  %s627_s16 = int_to_ptr.vmem [resolvable:$true] %s251_s16 }
  0x2a   :  { %v76_v8 = vld [vmem:[#allocation5 + $0x108] sm:$0xff]  ;;  %v366_v9 = vpack.c.bf16 %v44_v6, %v43_v4  ;;  %v368_v13 = vpack.c.bf16 %v62_v12, %v61_v11  ;;  %v45_v14 = vld [vmem:[#allocation5 + $0x10] sm:$0xff]  ;;  %v46_v15 = vld [vmem:[#allocation5 + $0x18] sm:$0xff]  ;;  %s557_s17 = smov [#allocation10]   ;;  %s474_s19 = scalar_lea.vmem %s242_s14, 128 }
  0x2b   :  { %v397_v10 = vpack.c.bf16 %v76_v8, %v75_v7  ;;  %365 = vmatprep.subr.bf16.mxu0 %v364_v5  ;;  %v77_v16 = vld [vmem:[#allocation5 + $0x110] sm:$0xff]  ;;  %v78_v17 = vld [vmem:[#allocation5 + $0x118] sm:$0xff]  ;;  %v63_v18 = vld [vmem:[#allocation5 + $0xa0] sm:$0xff]  ;;  %v370_v20 = vpack.c.bf16 %v46_v15, %v45_v14  ;;  %s261_s18 = sshll.u32 %s557_s17, 4  ;;  %p475_p2 = scmp.ne.s32.totalorder %s242_s14, %s474_s19  ;;  %s629_s18 = int_to_ptr.vmem [resolvable:$true] %s261_s18 }
  0x2c   :  { %367 = vmatpush3.bf16.xpose.msra.mxu0 %v366_v9  ;;  %v64_v19 = vld [vmem:[#allocation5 + $0xa8] sm:$0xff]  ;;  %v400_v21 = vpack.c.bf16 %v78_v17, %v77_v16  ;;  %v47_v23 = vld [vmem:[#allocation5 + $0x20] sm:$0xff]  ;;  %v65_v27 = vld [vmem:[#allocation5 + $0xb0] sm:$0xff]  ;;  %p479_p3 = scmp.lt.s32.totalorder %s242_s14, %s242_s14  ;;  %p480_p4 = scmp.lt.s32.totalorder %s474_s19, %s474_s19 }
  0x2d   :  { %398 = vmatpush3.bf16.xpose.msra.mxu1 %v397_v10  ;;  %369 = vmatprep.subr.bf16.mxu0 %v368_v13  ;;  %v372_v22 = vpack.c.bf16 %v64_v19, %v63_v18  ;;  %v48_v24 = vld [vmem:[#allocation5 + $0x28] sm:$0xff]  ;;  %v79_v25 = vld [vmem:[#allocation5 + $0x120] sm:$0xff]  ;;  %v66_v28 = vld [vmem:[#allocation5 + $0xb8] sm:$0xff] }
  0x2e   :  { %399 = vmatprep.subr.bf16.mxu1 %v552_v0  ;;  %v80_v26 = vld [vmem:[#allocation5 + $0x128] sm:$0xff]  ;;  %v374_v29 = vpack.c.bf16 %v48_v24, %v47_v23  ;;  %v617_v31 = vld [vmem:[#allocation2] sm:$0xff]  ;;  %v376_v32 = vpack.c.bf16 %v66_v28, %v65_v27  ;;  %v49_v33 = vld [vmem:[#allocation5 + $0x30] sm:$0xff]  ;;  %p481_p5 = por %p480_p4, %p479_p3 }
  0x2f   :  { %v403_v30 = vpack.c.bf16 %v80_v26, %v79_v25  ;;  %310 = vmatprep.mubr.f32.mxu0 %v617_v31  ;;  %v50_v34 = vld [vmem:[#allocation5 + $0x38] sm:$0xff]  ;;  %v81_v35 = vld [vmem:[#allocation5 + $0x130] sm:$0xff]  ;;  %v67_v37 = vld [vmem:[#allocation5 + $0xc0] sm:$0xff] }
  0x30   :  { %v82_v36 = vld [vmem:[#allocation5 + $0x138] sm:$0xff]  ;;  %v68_v38 = vld [vmem:[#allocation5 + $0xc8] sm:$0xff]  ;;  %v378_v39 = vpack.c.bf16 %v50_v34, %v49_v33  ;;  %v51_v42 = vld [vmem:[#allocation5 + $0x40] sm:$0xff]  ;;  %p482_p6 = pnand %p481_p5, %p475_p2 }
  0x31   :  { %v406_v40 = vpack.c.bf16 %v82_v36, %v81_v35  ;;  %v380_v41 = vpack.c.bf16 %v68_v38, %v67_v37  ;;  %v52_v43 = vld [vmem:[#allocation5 + $0x48] sm:$0xff]  ;;  %v83_v44 = vld [vmem:[#allocation5 + $0x140] sm:$0xff]  ;;  %v69_v46 = vld [vmem:[#allocation5 + $0xd0] sm:$0xff] }
  0x32   :  { %v84_v45 = vld [vmem:[#allocation5 + $0x148] sm:$0xff]  ;;  %v70_v47 = vld [vmem:[#allocation5 + $0xd8] sm:$0xff]  ;;  %v382_v48 = vpack.c.bf16 %v52_v43, %v51_v42  ;;  %v53_v51 = vld [vmem:[#allocation5 + $0x50] sm:$0xff] }
  0x33   :  { %v409_v49 = vpack.c.bf16 %v84_v45, %v83_v44  ;;  %v384_v50 = vpack.c.bf16 %v70_v47, %v69_v46  ;;  %v54_v52 = vld [vmem:[#allocation5 + $0x58] sm:$0xff]  ;;  %v85_v53 = vld [vmem:[#allocation5 + $0x150] sm:$0xff]  ;;  %v71_v55 = vld [vmem:[#allocation5 + $0xe0] sm:$0xff] }
  0x34   :  { %371 = vmatpush3.bf16.xpose.msra.mxu0 %v370_v20  ;;  %v86_v54 = vld [vmem:[#allocation5 + $0x158] sm:$0xff]  ;;  %v72_v56 = vld [vmem:[#allocation5 + $0xe8] sm:$0xff]  ;;  %v386_v57 = vpack.c.bf16 %v54_v52, %v53_v51  ;;  %v55_v60 = vld [vmem:[#allocation5 + $0x60] sm:$0xff] }
  0x35   :  { %401 = vmatpush3.bf16.xpose.msra.mxu1 %v400_v21  ;;  %373 = vmatprep.subr.bf16.mxu0 %v372_v22  ;;  %v412_v58 = vpack.c.bf16 %v86_v54, %v85_v53  ;;  %v388_v59 = vpack.c.bf16 %v72_v56, %v71_v55  ;;  %v56_v61 = vld [vmem:[#allocation5 + $0x68] sm:$0xff]  ;;  %v87_v62 = vld [vmem:[#allocation5 + $0x160] sm:$0xff]  ;;  %v73_v1 = vld [vmem:[#allocation5 + $0xf0] sm:$0xff] }
  0x36   :  { %402 = vmatprep.subr.bf16.mxu1 %v552_v0  ;;  %v88_v63 = vld [vmem:[#allocation5 + $0x168] sm:$0xff]  ;;  %v74_v2 = vld [vmem:[#allocation5 + $0xf8] sm:$0xff]  ;;  %v390_v3 = vpack.c.bf16 %v56_v61, %v55_v60  ;;  %v57_v6 = vld [vmem:[#allocation5 + $0x70] sm:$0xff] }
  0x37   :  { %v415_v4 = vpack.c.bf16 %v88_v63, %v87_v62  ;;  %v392_v5 = vpack.c.bf16 %v74_v2, %v73_v1  ;;  %v58_v7 = vld [vmem:[#allocation5 + $0x78] sm:$0xff]  ;;  %v89_v8 = vld [vmem:[#allocation5 + $0x170] sm:$0xff] }
  0x38   :  { %v90_v9 = vld [vmem:[#allocation5 + $0x178] sm:$0xff]  ;;  %v394_v10 = vpack.c.bf16 %v58_v7, %v57_v6 }
  0x39   :  { %v418_v11 = vpack.c.bf16 %v90_v9, %v89_v8 }
  0x3c   :  { %375 = vmatpush3.bf16.xpose.msra.mxu0 %v374_v29 }
  0x3d   :  { %404 = vmatpush3.bf16.xpose.msra.mxu1 %v403_v30  ;;  %377 = vmatprep.subr.bf16.mxu0 %v376_v32 }
  0x3e   :  { %405 = vmatprep.subr.bf16.mxu1 %v552_v0 }
  0x44   :  { %379 = vmatpush3.bf16.xpose.msra.mxu0 %v378_v39 }
  0x45   :  { %407 = vmatpush3.bf16.xpose.msra.mxu1 %v406_v40  ;;  %381 = vmatprep.subr.bf16.mxu0 %v380_v41 }
  0x46   :  { %408 = vmatprep.subr.bf16.mxu1 %v552_v0 }
  0x4c   :  { %383 = vmatpush3.bf16.xpose.msra.mxu0 %v382_v48 }
  0x4d   :  { %410 = vmatpush3.bf16.xpose.msra.mxu1 %v409_v49  ;;  %385 = vmatprep.subr.bf16.mxu0 %v384_v50 }
  0x4e   :  { %411 = vmatprep.subr.bf16.mxu1 %v552_v0 }
  0x54   :  { %387 = vmatpush3.bf16.xpose.msra.mxu0 %v386_v57 }
  0x55   :  { %413 = vmatpush3.bf16.xpose.msra.mxu1 %v412_v58  ;;  %389 = vmatprep.subr.bf16.mxu0 %v388_v59 }
  0x56   :  { %414 = vmatprep.subr.bf16.mxu1 %v552_v0 }
  0x5c   :  { %391 = vmatpush3.bf16.xpose.msra.mxu0 %v390_v3 }
  0x5d   :  { %416 = vmatpush3.bf16.xpose.msra.mxu1 %v415_v4  ;;  %393 = vmatprep.subr.bf16.mxu0 %v392_v5 }
  0x5e   :  { %417 = vmatprep.subr.bf16.mxu1 %v552_v0 }
  0x64   :  { %395 = vmatpush3.bf16.xpose.msra.mxu0 %v394_v10 }
  0x65   :  { %419 = vmatpush3.bf16.xpose.msra.mxu1 %v418_v11 }
  0x6b   :  { %311 = vmatmul.mubr.f32.vlgmr.msra.gmra.mrb[0].mxu0 %v617_v31 }
  0x6c   :  { %362 = vmatmul.mubr.f32.vlgmr.msra.gmra.mrb[0].mxu1 %v617_v31 }
 0x13e   :  { %v157_v12 = vpop.f32.mrb[0].mxu0 }
 0x13f   :  { %v228_v13 = vpop.f32.mrb[0].mxu1  ;;  %232 = vst [vmem:[#allocation7] sm:$0xff] %v157_v12  ;;  %v159_v0 = vpop.f32.mrb[1].mxu0 }
 0x140   :  { %234 = vst [vmem:[#allocation10] sm:$0xff] %v228_v13  ;;  %v363_v14 = vpop.f32.mrb[1].mxu1  ;;  %233 = vst [vmem:[#allocation8] sm:$0xff] %v159_v0 }
 0x141   :  { %485 = shalt.err (!%p482_p6)
}
 0x142   :  { %s486_s22 = scalar_lea.hbm %s679_s2, 128 }
 0x143   :  { %p487_p7 = scmp.ne.s32.totalorder %s679_s2, %s486_s22  ;;  %p490_p8 = scmp.lt.u32.totalorder %s486_s22, %s679_s2 }
 0x145   :  { %p492_p9 = pnand %p490_p8, %p487_p7 }
 0x147   :  { %495 = shalt.err (!%p492_p9)
}
 0x148   :  { %244 = dma.vmem_to_hbm [thread:$0]  %s242_s14, 128, %s679_s2, [#allocation4]  }
 0x149   :  { %s496_s29 = scalar_lea.vmem %s627_s16, 128  ;;  %p501_p11 = scmp.lt.s32.totalorder %s627_s16, %s627_s16 }
 0x14a   :  { %p497_p10 = scmp.ne.s32.totalorder %s627_s16, %s496_s29  ;;  %p502_p12 = scmp.lt.s32.totalorder %s496_s29, %s496_s29 }
 0x14c   :  { %p503_p13 = por %p502_p12, %p501_p11 }
 0x14e   :  { %p504_p0 = pnand %p503_p13, %p497_p10 }
 0x150   :  { %507 = shalt.err (!%p504_p0)
}
 0x151   :  { %s508_s6 = scalar_lea.hbm %s680_s3, 128 }
 0x152   :  { %p509_p1 = scmp.ne.s32.totalorder %s680_s3, %s508_s6  ;;  %p512_p2 = scmp.lt.u32.totalorder %s508_s6, %s680_s3 }
 0x154   :  { %p514_p3 = pnand %p512_p2, %p509_p1 }
 0x156   :  { %517 = shalt.err (!%p514_p3)
}
 0x157   :  { %254 = dma.vmem_to_hbm [thread:$0]  %s627_s16, 128, %s680_s3, [#allocation9]  }
 0x158   :  { %s518_s11 = scalar_lea.vmem %s629_s18, 128  ;;  %p523_p5 = scmp.lt.s32.totalorder %s629_s18, %s629_s18 }
 0x159   :  { %p519_p4 = scmp.ne.s32.totalorder %s629_s18, %s518_s11  ;;  %p524_p6 = scmp.lt.s32.totalorder %s518_s11, %s518_s11 }
 0x15b   :  { %p525_p7 = por %p524_p6, %p523_p5 }
 0x15d   :  { %p526_p8 = pnand %p525_p7, %p519_p4 }
 0x15f   :  { %529 = shalt.err (!%p526_p8)
}
 0x160   :  { %s530_s1 = scalar_lea.hbm %s681_s4, 128 }
 0x161   :  { %p531_p9 = scmp.ne.s32.totalorder %s681_s4, %s530_s1  ;;  %p534_p10 = scmp.lt.u32.totalorder %s530_s1, %s681_s4 }
 0x163   :  { %p536_p11 = pnand %p534_p10, %p531_p9 }
 0x165   :  { %539 = shalt.err (!%p536_p11)
}
 0x166   :  { %264 = dma.vmem_to_hbm [thread:$0]  %s629_s18, 128, %s681_s4, [#allocation9]  }
 0x167   :  { %544 = dma.done.wait [#allocation4], 128  }
 0x168   :  { %545 = vsyncadd [#allocation4], 4294967168 }
 0x169   :  { %546 = dma.done.wait [#allocation9], 256  }
 0x16a   :  { %547 = vsyncadd [#allocation9], 4294967040 }
 0x16b   :  { %274 = vsyncpa [#allocation3], 1 }
 0x16c   :  { %275 = vsyncpa [#allocation6], 1 }
 0x16d   :  { %276 = vsyncpa [#allocation4], 1 }
 0x16e   :  { %277 = vsyncpa [#allocation9], 1 }

</bundles_post_ra>
